<compile_context>
chip_gen: v5e
topology: v5e:2x2
jax: 0.10.0
libtpu: 0.0.40
codegen_flags: <defaults>
</compile_context>

<pallas_src>
import functools

import jax
import jax.numpy as jnp
from jax.experimental import pallas as pl
from jax.experimental.pallas import tpu as pltpu

_LANE = 128
_SUB = 8


def _round_up(x, m):
    return (x + m - 1) // m * m


def _tpu_kind():
    try:
        return jax.devices()[0].device_kind.lower()
    except Exception:
        return ""


def _ftl_partials_kernel(x_ref, t_ref, acc_ref, *, n_valid, block_rows,
                         blocks_per_core, exact, ignore_index, activation):
    """Accumulates per-core partial sums into acc_ref (3, 8, 128):
       acc[0] = sum(p * t), acc[1] = sum(p), acc[2] = sum(t)  (masked)."""
    c = pl.program_id(0)     # core / partial-sum slot      ("parallel")
    i = pl.program_id(1)     # serial block index per core  ("arbitrary")

    @pl.when(i == 0)
    def _init():
        acc_ref[...] = jnp.zeros_like(acc_ref)

    t_raw = t_ref[...]

    # ignore-index compare in the *native* target dtype (packed vregs for
    # sub-32-bit labels; no float-equality-after-cast concerns).
    t_dt = t_raw.dtype
    if jnp.issubdtype(t_dt, jnp.unsignedinteger) and ignore_index < 0:
        keep = None                      # ignore value can never match: keep all
    else:
        keep = t_raw != jnp.asarray(ignore_index, dtype=t_dt)

    x = x_ref[...].astype(jnp.float32)
    t = t_raw.astype(jnp.float32)

    if activation:
        # sigmoid(x) == 0.5 * tanh(0.5 * x) + 0.5 : one EUP op + two VALU ops.
        p = jnp.tanh(x * 0.5) * 0.5 + 0.5
    else:
        p = x

    fold = block_rows // _SUB

    def _accumulate(mask):
        if mask is None:
            pm, tm = p, t
        else:
            zero = jnp.zeros((), jnp.float32)
            pm = jnp.where(mask, p, zero)   # select shields NaN/garbage pad rows
            tm = jnp.where(mask, t, zero)
        # Fold the (block_rows, 128) tile into one (8, 128) vreg per quantity:
        # pure VPU adds, no per-step cross-lane reduce.
        acc_ref[0] += jnp.sum((pm * tm).reshape(fold, _SUB, _LANE), axis=0)
        acc_ref[1] += jnp.sum(pm.reshape(fold, _SUB, _LANE), axis=0)
        acc_ref[2] += jnp.sum(tm.reshape(fold, _SUB, _LANE), axis=0)

    if exact:
        # Every block is full and real: no iota, no runtime branch.
        _accumulate(keep)
    else:
        row_start = (c * blocks_per_core + i) * block_rows
        blk_end = (row_start + block_rows) * _LANE

        @pl.when(blk_end <= n_valid)
        def _interior():                 # fast path: only the ignore mask
            _accumulate(keep)

        @pl.when(blk_end > n_valid)
        def _tail():                     # ragged tail / phantom block
            row_iota = jax.lax.broadcasted_iota(
                jnp.int32, (block_rows, _LANE), 0)
            lane_iota = jax.lax.broadcasted_iota(
                jnp.int32, (block_rows, _LANE), 1)
            flat_id = row_start * _LANE + row_iota * _LANE + lane_iota
            elem_ok = flat_id < n_valid
            _accumulate(elem_ok if keep is None else (keep & elem_ok))


def focal_tversky_loss(
    inputs,
    targets,
    *,
    ignore_index=-1,
    smooth=100.0,
    alpha=0.3,
    beta=0.7,
    gamma=4.0 / 3.0,
    activation=True,
):
    x = inputs.reshape(-1)
    t = targets.reshape(-1)
    n_valid = x.shape[0]

    # Sublane multiple depends on dtype packing (f32:8, bf16:16, int8:32).
    def sub_mult(dt):
        return max(_SUB, 32 // jnp.dtype(dt).itemsize)

    mult = max(sub_mult(x.dtype), sub_mult(t.dtype))

    kind = _tpu_kind()
    num_cores = 2 if ("v7" in kind or "v4" in kind) else 1   # 2-TC chips only
    max_rows = 2048 if "v7" in kind else 4096                # VMEM-lean on v7x

    # Pad (zeros) only when not (mult*128)-aligned; padded elements are
    # excluded in-kernel by the element-index mask, so the pad value is moot.
    padded_n = _round_up(n_valid, mult * _LANE)
    pad = padded_n - n_valid
    if pad:
        x = jnp.pad(x, (0, pad))
        t = jnp.pad(t, (0, pad))

    n_rows = padded_n // _LANE
    x2 = x.reshape(n_rows, _LANE)   # free reshape, no cast, no copy
    t2 = t.reshape(n_rows, _LANE)

    block_rows = min(max_rows, n_rows)          # both multiples of `mult`
    n_blocks = pl.cdiv(n_rows, block_rows)
    blocks_per_core = pl.cdiv(n_blocks, num_cores)
    grid = (num_cores, blocks_per_core)

    exact = (pad == 0
             and n_rows % block_rows == 0
             and n_blocks % num_cores == 0)

    if n_blocks % num_cores == 0:
        def in_map(c, i):
            return (c * blocks_per_core + i, 0)
    else:
        def in_map(c, i):
            # Clamp so a phantom step never indexes past the last real block;
            # the in-kernel element mask zeroes out any re-read data.
            return (jnp.minimum(c * blocks_per_core + i, n_blocks - 1), 0)

    kernel = functools.partial(
        _ftl_partials_kernel,
        n_valid=n_valid,
        block_rows=block_rows,
        blocks_per_core=blocks_per_core,
        exact=exact,
        ignore_index=ignore_index,
        activation=bool(activation),
    )

    out_bytes = num_cores * 3 * _SUB * _LANE * 4
    cost = pl.CostEstimate(
        flops=10 * n_valid,
        transcendentals=(n_valid if activation else 0),
        bytes_accessed=int(x2.size * x2.dtype.itemsize
                           + t2.size * t2.dtype.itemsize + out_bytes),
    )

    partials = pl.pallas_call(
        kernel,
        out_shape=jax.ShapeDtypeStruct((num_cores * 3, _SUB, _LANE),
                                       jnp.float32),
        grid_spec=pltpu.PrefetchScalarGridSpec(
            num_scalar_prefetch=0,
            grid=grid,
            in_specs=[
                pl.BlockSpec((block_rows, _LANE), in_map),
                pl.BlockSpec((block_rows, _LANE), in_map),
            ],
            out_specs=pl.BlockSpec((3, _SUB, _LANE), lambda c, i: (c, 0, 0)),
        ),
        compiler_params=pltpu.CompilerParams(
            dimension_semantics=("parallel", "arbitrary"),
            vmem_limit_bytes=32 * 1024 * 1024,
        ),
        cost_estimate=cost,
    )(x2, t2)

    # Final cross-lane/core reduction + the scalar combine in JAX glue.
    sums = partials.reshape(num_cores, 3, _SUB * _LANE).sum(axis=(0, 2))
    TP = sums[0]
    FP = sums[1] - TP   # sum((1-t)*p) over valid elements
    FN = sums[2] - TP   # sum(t*(1-p)) over valid elements
    tversky = (TP + smooth) / (TP + alpha * FP + beta * FN + smooth)
    return (1.0 - tversky + 1e-10) ** gamma


def _reference(inputs, targets, *, ignore_index=-1, smooth=100.0, alpha=0.3,
               beta=0.7, gamma=4.0 / 3.0, activation=True):
    x = inputs.reshape(-1).astype(jnp.float32)
    t = targets.reshape(-1).astype(jnp.float32)
    if activation:
        x = jax.nn.sigmoid(x)
    mask = (t != ignore_index).astype(jnp.float32)
    xm = x * mask
    tm = t * mask
    TP = jnp.sum(xm * tm)
    FP = jnp.sum((mask - tm) * xm)
    FN = jnp.sum(tm * (mask - xm))
    tversky = (TP + smooth) / (TP + alpha * FP + beta * FN + smooth)
    return (1.0 - tversky + 1e-10) ** gamma


if __name__ == "__main__":
    key = jax.random.PRNGKey(0)
    k1, k2 = jax.random.split(key)

    # segmentation logits/labels pair (NCHW), same as the PyTorch module
    B, C, H, W = 2, 4, 16, 16
    logits = jax.random.normal(k1, (B, C, H, W), dtype=jnp.float32)
    # targets in {-1 (ignore), 0, 1}
    targets = jax.random.randint(k2, (B, C, H, W), minval=-1, maxval=2).astype(
        jnp.float32
    )

    loss = jax.block_until_ready(focal_tversky_loss(logits, targets))
    ref = jax.block_until_ready(_reference(logits, targets))
    assert jnp.allclose(loss, ref, rtol=2e-5, atol=1e-6), (loss, ref)

    print("KERNEL_OK")
</pallas_src>

<mosaic_0001>
module attributes {stable_mosaic.version = 11 : i64} {
  func.func @_ftl_partials_kernel(%arg0: i32, %arg1: i32, %arg2: memref<16x128xf32, #tpu.memory_space<vmem>>, %arg3: memref<16x128xf32, #tpu.memory_space<vmem>>, %arg4: memref<3x8x128xf32, #tpu.memory_space<vmem>>) attributes {dimension_semantics = [#tpu.dimension_semantics<parallel>, #tpu.dimension_semantics<arbitrary>], iteration_bounds = array<i64: 1, 1>, scalar_prefetch = 0 : i64, scratch_operands = 0 : i64, tpu.core_type = #tpu.core_type<tc>, window_params = [{transform_indices = @transform_0, window_bounds = array<i64: 16, 128>}, {transform_indices = @transform_1, window_bounds = array<i64: 16, 128>}, {transform_indices = @transform_2, window_bounds = array<i64: 3, 8, 128>}]} {
    %c0_i32 = arith.constant 0 : i32
    %0 = arith.cmpi eq, %arg1, %c0_i32 : i32
    %1 = arith.extui %0 : i1 to i32
    %c0_i32_0 = arith.constant 0 : i32
    %2 = arith.cmpi ne, %1, %c0_i32_0 : i32
    scf.if %2 {
      %cst_28 = arith.constant 0.000000e+00 : f32
      %43 = vector.broadcast %cst_28 : f32 to vector<3x8x128xf32>
      %c0_29 = arith.constant 0 : index
      %c0_30 = arith.constant 0 : index
      %c0_31 = arith.constant 0 : index
      %44 = vector.load %arg4[%c0_29, %c0_30, %c0_31] : memref<3x8x128xf32, #tpu.memory_space<vmem>>, vector<3x8x128xf32>
      tpu.vector_store %arg4[%c0_29, %c0_30, %c0_31], %43 {strides = array<i32>} : memref<3x8x128xf32, #tpu.memory_space<vmem>>, vector<3x8x128xf32>,
    } else {
    }
    %c0 = arith.constant 0 : index
    %c0_1 = arith.constant 0 : index
    %3 = vector.load %arg3[%c0, %c0_1] : memref<16x128xf32, #tpu.memory_space<vmem>>, vector<16x128xf32>
    %cst = arith.constant -1.000000e+00 : f32
    %4 = vector.broadcast %cst : f32 to vector<16x128xf32>
    %5 = arith.cmpf one, %3, %4 : vector<16x128xf32>
    %c0_2 = arith.constant 0 : index
    %c0_3 = arith.constant 0 : index
    %6 = vector.load %arg2[%c0_2, %c0_3] : memref<16x128xf32, #tpu.memory_space<vmem>>, vector<16x128xf32>
    %cst_4 = arith.constant 5.000000e-01 : f32
    %7 = vector.broadcast %cst_4 : f32 to vector<16x128xf32>
    %8 = arith.mulf %6, %7 : vector<16x128xf32>
    %9 = math.tanh %8 : vector<16x128xf32>
    %cst_5 = arith.constant 5.000000e-01 : f32
    %10 = vector.broadcast %cst_5 : f32 to vector<16x128xf32>
    %11 = arith.mulf %9, %10 : vector<16x128xf32>
    %cst_6 = arith.constant 5.000000e-01 : f32
    %12 = vector.broadcast %cst_6 : f32 to vector<16x128xf32>
    %13 = arith.addf %11, %12 : vector<16x128xf32>
    %cst_7 = arith.constant 0.000000e+00 : f32
    %14 = vector.broadcast %cst_7 : f32 to vector<16x128xf32>
    %15 = arith.select %5, %13, %14 : vector<16x128xi1>, vector<16x128xf32>
    %cst_8 = arith.constant 0.000000e+00 : f32
    %16 = vector.broadcast %cst_8 : f32 to vector<16x128xf32>
    %17 = arith.select %5, %3, %16 : vector<16x128xi1>, vector<16x128xf32>
    %c0_9 = arith.constant 0 : index
    %c0_10 = arith.constant 0 : index
    %c0_11 = arith.constant 0 : index
    %18 = vector.load %arg4[%c0_9, %c0_10, %c0_11] : memref<3x8x128xf32, #tpu.memory_space<vmem>>, vector<1x8x128xf32>
    %19 = vector.shape_cast %18 : vector<1x8x128xf32> to vector<8x128xf32>
    %20 = arith.mulf %15, %17 : vector<16x128xf32>
    %21 = vector.shape_cast %20 : vector<16x128xf32> to vector<2x8x128xf32>
    %cst_12 = arith.constant dense<0.000000e+00> : vector<8x128xf32>
    %22 = vector.multi_reduction <add>, %21, %cst_12 [0] : vector<2x8x128xf32> to vector<8x128xf32>
    %23 = arith.addf %19, %22 : vector<8x128xf32>
    %c0_13 = arith.constant 0 : index
    %c0_14 = arith.constant 0 : index
    %c0_15 = arith.constant 0 : index
    %24 = vector.load %arg4[%c0_13, %c0_14, %c0_15] : memref<3x8x128xf32, #tpu.memory_space<vmem>>, vector<1x8x128xf32>
    %25 = vector.shape_cast %24 : vector<1x8x128xf32> to vector<8x128xf32>
    %26 = vector.shape_cast %23 : vector<8x128xf32> to vector<1x8x128xf32>
    tpu.vector_store %arg4[%c0_13, %c0_14, %c0_15], %26 {strides = array<i32>} : memref<3x8x128xf32, #tpu.memory_space<vmem>>, vector<1x8x128xf32>,
    %c1 = arith.constant 1 : index
    %c0_16 = arith.constant 0 : index
    %c0_17 = arith.constant 0 : index
    %27 = vector.load %arg4[%c1, %c0_16, %c0_17] : memref<3x8x128xf32, #tpu.memory_space<vmem>>, vector<1x8x128xf32>
    %28 = vector.shape_cast %27 : vector<1x8x128xf32> to vector<8x128xf32>
    %29 = vector.shape_cast %15 : vector<16x128xf32> to vector<2x8x128xf32>
    %cst_18 = arith.constant dense<0.000000e+00> : vector<8x128xf32>
    %30 = vector.multi_reduction <add>, %29, %cst_18 [0] : vector<2x8x128xf32> to vector<8x128xf32>
    %31 = arith.addf %28, %30 : vector<8x128xf32>
    %c1_19 = arith.constant 1 : index
    %c0_20 = arith.constant 0 : index
    %c0_21 = arith.constant 0 : index
    %32 = vector.load %arg4[%c1_19, %c0_20, %c0_21] : memref<3x8x128xf32, #tpu.memory_space<vmem>>, vector<1x8x128xf32>
    %33 = vector.shape_cast %32 : vector<1x8x128xf32> to vector<8x128xf32>
    %34 = vector.shape_cast %31 : vector<8x128xf32> to vector<1x8x128xf32>
    tpu.vector_store %arg4[%c1_19, %c0_20, %c0_21], %34 {strides = array<i32>} : memref<3x8x128xf32, #tpu.memory_space<vmem>>, vector<1x8x128xf32>,
    %c2 = arith.constant 2 : index
    %c0_22 = arith.constant 0 : index
    %c0_23 = arith.constant 0 : index
    %35 = vector.load %arg4[%c2, %c0_22, %c0_23] : memref<3x8x128xf32, #tpu.memory_space<vmem>>, vector<1x8x128xf32>
    %36 = vector.shape_cast %35 : vector<1x8x128xf32> to vector<8x128xf32>
    %37 = vector.shape_cast %17 : vector<16x128xf32> to vector<2x8x128xf32>
    %cst_24 = arith.constant dense<0.000000e+00> : vector<8x128xf32>
    %38 = vector.multi_reduction <add>, %37, %cst_24 [0] : vector<2x8x128xf32> to vector<8x128xf32>
    %39 = arith.addf %36, %38 : vector<8x128xf32>
    %c2_25 = arith.constant 2 : index
    %c0_26 = arith.constant 0 : index
    %c0_27 = arith.constant 0 : index
    %40 = vector.load %arg4[%c2_25, %c0_26, %c0_27] : memref<3x8x128xf32, #tpu.memory_space<vmem>>, vector<1x8x128xf32>
    %41 = vector.shape_cast %40 : vector<1x8x128xf32> to vector<8x128xf32>
    %42 = vector.shape_cast %39 : vector<8x128xf32> to vector<1x8x128xf32>
    tpu.vector_store %arg4[%c2_25, %c0_26, %c0_27], %42 {strides = array<i32>} : memref<3x8x128xf32, #tpu.memory_space<vmem>>, vector<1x8x128xf32>,
    return
  }
  func.func @transform_0(%arg0: i32, %arg1: i32) -> (i32, i32) {
    %c1_i32 = arith.constant 1 : i32
    %0 = arith.muli %arg0, %c1_i32 : i32
    %1 = arith.addi %0, %arg1 : i32
    %c0_i32 = arith.constant 0 : i32
    %c0_i32_0 = arith.constant 0 : i32
    return %1, %c0_i32 : i32, i32
  }
  func.func @transform_1(%arg0: i32, %arg1: i32) -> (i32, i32) {
    %c1_i32 = arith.constant 1 : i32
    %0 = arith.muli %arg0, %c1_i32 : i32
    %1 = arith.addi %0, %arg1 : i32
    %c0_i32 = arith.constant 0 : i32
    %c0_i32_0 = arith.constant 0 : i32
    return %1, %c0_i32 : i32, i32
  }
  func.func @transform_2(%arg0: i32, %arg1: i32) -> (i32, i32, i32) {
    %c0_i32 = arith.constant 0 : i32
    %c0_i32_0 = arith.constant 0 : i32
    %c0_i32_1 = arith.constant 0 : i32
    return %arg0, %c0_i32, %c0_i32_0 : i32, i32, i32
  }
}

</mosaic_0001>

<bundles_post_ra>
// kernel: tpu_custom_call.1
= control target key start
LH: loop header
LB: loop body
LE: loop exit
PB: predicated region body
PF: predicated region fallthrough
CT: control target
= control target key end

     0   :  { %7 = vsyncpa [#allocation3], 0  ;;  %s247_s0 = inlined_call_operand.hbm [shape: f32[16,128], index: 0, kind: input, shape index: {}]   ;;  %s248_s1 = inlined_call_operand.hbm [shape: f32[16,128], index: 1, kind: input, shape index: {}]   ;;  %s249_s2 = inlined_call_operand.hbm [shape: f32[3,8,128], index: 2, kind: output, shape index: {}]  }
   0x1   :  { %8 = vsyncpa [#allocation6], 0 }
   0x2   :  { %9 = vsyncpa [#allocation4], 0  ;;  %s18_s11 = sshll.u32 %s247_s0, 4  ;;  %s205_s12 = smov [#allocation2]   ;;  %s19_s11 = int_to_ptr.hbm [resolvable:$true] %s18_s11 }
   0x3   :  { %s20_s13 = sshll.u32 %s205_s12, 4  ;;  %s35_s16 = sshll.u32 %s248_s1, 4  ;;  %s21_s13 = int_to_ptr.vmem [resolvable:$true] %s20_s13  ;;  %s36_s16 = int_to_ptr.hbm [resolvable:$true] %s35_s16 }
   0x4   :  { %s206_s17 = smov 128   ;;  %s207_s18 = smov 8  }
   0x5   :  { %26 = dma.hbm_to_vmem [thread:$0]  %s19_s11, 256, %s21_s13, [#allocation3], %s206_s17, %s206_s17, %s207_s18  }
   0x6   :  { %s208_s19 = smov [#allocation5]  }
   0x7   :  { %s37_s20 = sshll.u32 %s208_s19, 4  ;;  %s38_s20 = int_to_ptr.vmem [resolvable:$true] %s37_s20 }
   0x8   :  { %43 = dma.hbm_to_vmem [thread:$0]  %s36_s16, 256, %s38_s20, [#allocation6], %s206_s17, %s206_s17, %s207_s18  }
   0x9   :  { %199 = dma.done.wait [#allocation3], 256  }
   0xa   :  { %200 = vsyncadd [#allocation3], 4294967040 }
   0xb   :  { %201 = dma.done.wait [#allocation6], 256  }
   0xc   :  { %202 = vsyncadd [#allocation6], 4294967040  ;;  %v63_v0 = vld [vmem:[#allocation5] sm:$0xff]  ;;  %v64_v1 = vld [vmem:[#allocation5 + $0x8] sm:$0xff]  ;;  %s209_s0 = smov [#allocation7]   ;;  %s103_s23 = sshll.u32 %s249_s2, 4  ;;  %s104_s23 = int_to_ptr.hbm [resolvable:$true] %s103_s23 }
   0xd   :  { %v67_v2 = vld [vmem:[#allocation2] sm:$0xff]  ;;  %vm65_vm0 = vcmp.ne.f32.partialorder %v63_v0, -1.0  ;;  %vm66_vm1 = vcmp.ne.f32.partialorder %v64_v1, -1.0  ;;  %v68_v3 = vld [vmem:[#allocation2 + $0x8] sm:$0xff]  ;;  %s101_s1 = sshll.u32 %s209_s0, 4  ;;  %s102_s1 = int_to_ptr.vmem [resolvable:$true] %s101_s1 }
   0xe   :  { %v69_v4 = vmul.f32 0.5, %v67_v2  ;;  %v70_v5 = vmul.f32 0.5, %v68_v3  ;;  %v79_v6 = vsel %vm65_vm0, %v63_v0, 0.0  ;;  %v80_v7 = vsel %vm66_vm1, %v64_v1, 0.0 }
   0xf   :  { %v94_v8 = vadd.f32 %v80_v7, %v79_v6 }
  0x10   :  { %123 = vtanh.f32 %v69_v4 }
  0x11   :  { %125 = vtanh.f32 %v70_v5  ;;  %96 = vst [vmem:[#allocation7 + $0x10] sm:$0xff] %v94_v8 }
  0x16   :  { %v124_v9 = vpop.eup %123 }
  0x17   :  { %v126_v10 = vpop.eup %125  ;;  %v73_v11 = vmul.f32 0.5, %v124_v9 }
  0x18   :  { %v74_v12 = vmul.f32 0.5, %v126_v10 }
  0x19   :  { %v75_v13 = vadd.f32 0.5, %v73_v11 }
  0x1a   :  { %v76_v14 = vadd.f32 0.5, %v74_v12 }
  0x1b   :  { %v77_v15 = vsel %vm65_vm0, %v75_v13, 0.0 }
  0x1c   :  { %v78_v16 = vsel %vm66_vm1, %v76_v14, 0.0  ;;  %v82_v17 = vmul.f32 %v79_v6, %v77_v15 }
  0x1d   :  { %v83_v18 = vmul.f32 %v80_v7, %v78_v16  ;;  %v89_v19 = vadd.f32 %v78_v16, %v77_v15 }
  0x1f   :  { %v84_v20 = vadd.f32 %v83_v18, %v82_v17  ;;  %91 = vst [vmem:[#allocation7 + $0x8] sm:$0xff] %v89_v19 }
  0x21   :  { %86 = vst [vmem:[#allocation7] sm:$0xff] %v84_v20 }
  0x22   :  { %109 = dma.vmem_to_hbm [thread:$0]  %s102_s1, 384, %s104_s23, [#allocation4], %s206_s17, %s206_s17, %s207_s18  }
  0x23   :  { %203 = dma.done.wait [#allocation4], 384  }
  0x24   :  { %204 = vsyncadd [#allocation4], 4294966912 }
  0x25   :  { %114 = vsyncpa [#allocation3], 1 }
  0x26   :  { %115 = vsyncpa [#allocation6], 1 }
  0x27   :  { %116 = vsyncpa [#allocation4], 1 }

</bundles_post_ra>
